<compile_context>
chip_gen: v6e
topology: v6e:2x2x1
jax: 0.10.0
libtpu: 0.0.40
codegen_flags: <defaults>
</compile_context>

<pallas_src>
import jax
import jax.numpy as jnp
from jax.experimental import pallas as pl
from jax.experimental.pallas import tpu as pltpu

LANE = 128
SUBLANE = 8


def _round_up(x, m):
    return ((x + m - 1) // m) * m


def _pad_to(x, axis, new_size):
    pad = [(0, 0)] * x.ndim
    pad[axis] = (0, new_size - x.shape[axis])
    return jnp.pad(x, pad)


def _pad_gate_cols(w_t, h, hp):
    """(in, 3*h) -> (in, 3*hp), zero-padding each gate block independently."""
    rows = w_t.shape[0]
    w3 = w_t.reshape(rows, 3, h)
    w3 = _pad_to(w3, 2, hp)
    return w3.reshape(rows, 3 * hp)


# ---------------------------------------------------------------------------
# Kernel: one grid step == one decode step.  Weights stay VMEM-resident
# (constant block index); the hidden state is carried in a VMEM scratch.
# ---------------------------------------------------------------------------
def decoder_decode_kernel(ids_ref, ctx_ref, h0_ref, emb_tbl_ref,
                          w_ih_ref, w_hh_ref, b_gi_ref, b_hn_ref,
                          w_fc_ref, b_fc_ref,
                          pred_ref, h_out_ref, h_carry):
    t = pl.program_id(0)
    B, Hp = h_carry.shape
    Vp = emb_tbl_ref.shape[0]

    # Initialize the carried hidden state at the first step.  h0's pad lanes
    # are zero, and they stay exactly zero through the recurrence.
    @pl.when(t == 0)
    def _():
        h_carry[...] = h0_ref[...]

    # --- Embedding lookup as a one-hot matmul (MXU; no gather round-trip).
    ids = ids_ref[0]                                                  # (B, 1) i32
    iota_v = jax.lax.broadcasted_iota(jnp.int32, (B, Vp), 1)          # (B, Vp)
    onehot = jnp.where(ids == iota_v, 1.0, 0.0).astype(jnp.bfloat16)
    emb_bf = jnp.dot(onehot, emb_tbl_ref[...],
                     preferred_element_type=jnp.float32).astype(jnp.bfloat16)

    ctx_f = ctx_ref[...]                                              # (B, Hp) f32
    ctx_bf = ctx_f.astype(jnp.bfloat16)
    h_f = h_carry[...]                                                # (B, Hp) f32
    h_bf = h_f.astype(jnp.bfloat16)

    # --- GRU: single K=(Ep+Hp) matmul on the stacked input weight.
    # Both pieces are 128-lane aligned, so the concat is a free tile placement.
    x_bf = jnp.concatenate([emb_bf, ctx_bf], axis=1)                  # (B, Ep+Hp)
    gi = (jnp.dot(x_bf, w_ih_ref[...], preferred_element_type=jnp.float32)
          + b_gi_ref[...])                                            # (B, 3Hp)
    gh = jnp.dot(h_bf, w_hh_ref[...], preferred_element_type=jnp.float32)

    # PyTorch gate order [r, z, n]; each gate block is Hp lanes (128-aligned).
    r = jax.nn.sigmoid(gi[:, 0 * Hp:1 * Hp] + gh[:, 0 * Hp:1 * Hp])
    z = jax.nn.sigmoid(gi[:, 1 * Hp:2 * Hp] + gh[:, 1 * Hp:2 * Hp])
    n = jnp.tanh(gi[:, 2 * Hp:3 * Hp] + r * (gh[:, 2 * Hp:3 * Hp] + b_hn_ref[...]))
    h_new = (1.0 - z) * n + z * h_f                                   # (B, Hp) f32
    h_carry[...] = h_new

    # --- prediction = fc(concat(emb, h_new, ctx)): single K=(Ep+2Hp) matmul.
    y_bf = jnp.concatenate([emb_bf, h_new.astype(jnp.bfloat16), ctx_bf], axis=1)
    pred = (jnp.dot(y_bf, w_fc_ref[...], preferred_element_type=jnp.float32)
            + b_fc_ref[...])                                          # (B, Vp)

    pred_ref[0] = pred

    @pl.when(t == pl.num_programs(0) - 1)
    def _():
        h_out_ref[...] = h_new


# ---------------------------------------------------------------------------
# One-time parameter layout prep: transpose, stack per-source weights, fold
# biases, pad to 128 lanes, cast to bf16.  Nothing layout-related runs per step.
# ---------------------------------------------------------------------------
def prepare_decoder_params(params):
    V, E = params["embedding"].shape
    H = params["w_hh"].shape[1]
    Vp, Ep, Hp = _round_up(V, LANE), _round_up(E, LANE), _round_up(H, LANE)

    emb_tbl = _pad_to(_pad_to(params["embedding"], 0, Vp), 1, Ep)     # (Vp, Ep)

    # GRU input weight stacked over [emb | ctx] rows -> (Ep+Hp, 3Hp).
    w_ih_t = params["w_ih"].T                                         # (E+H, 3H)
    w_ie = _pad_to(_pad_gate_cols(w_ih_t[:E], H, Hp), 0, Ep)          # (Ep, 3Hp)
    w_ic = _pad_to(_pad_gate_cols(w_ih_t[E:], H, Hp), 0, Hp)          # (Hp, 3Hp)
    w_ih = jnp.concatenate([w_ie, w_ic], axis=0)                      # (Ep+Hp, 3Hp)

    w_hh = _pad_to(_pad_gate_cols(params["w_hh"].T, H, Hp), 0, Hp)    # (Hp, 3Hp)

    # Fold r/z hidden biases into the input-side bias; keep the n-gate hidden
    # bias separate (it is scaled by r inside the tanh).
    b_ih3 = params["b_ih"].reshape(3, H)
    b_hh3 = params["b_hh"].reshape(3, H)
    b_gi3 = jnp.stack([b_ih3[0] + b_hh3[0], b_ih3[1] + b_hh3[1], b_ih3[2]], 0)
    b_gi = _pad_to(b_gi3, 1, Hp).reshape(1, 3 * Hp)                   # (1, 3Hp)
    b_hn = _pad_to(b_hh3[2][None, :], 1, Hp)                          # (1, Hp)

    # fc weight stacked over [emb | h | ctx] rows -> (Ep+2Hp, Vp).
    w_fc_t = params["w_fc"].T                                         # (E+2H, V)
    w_fe = _pad_to(_pad_to(w_fc_t[:E], 0, Ep), 1, Vp)
    w_fh = _pad_to(_pad_to(w_fc_t[E:E + H], 0, Hp), 1, Vp)
    w_fx = _pad_to(_pad_to(w_fc_t[E + H:], 0, Hp), 1, Vp)
    w_fc = jnp.concatenate([w_fe, w_fh, w_fx], axis=0)                # (Ep+2Hp, Vp)
    b_fc = _pad_to(params["b_fc"][None, :], 1, Vp)                    # (1, Vp)

    bf16 = jnp.bfloat16
    prep = {
        "emb_tbl": emb_tbl.astype(bf16),
        "w_ih": w_ih.astype(bf16),
        "w_hh": w_hh.astype(bf16),
        "b_gi": b_gi.astype(jnp.float32),
        "b_hn": b_hn.astype(jnp.float32),
        "w_fc": w_fc.astype(bf16),
        "b_fc": b_fc.astype(jnp.float32),
    }
    return prep, (V, E, H, Vp, Ep, Hp)


def make_rnn_decoder_decode(dims):
    """Returns decode(input_ids (T,B), hidden (1,B,H), context (1,B,H), prep)
       -> (predictions (T,B,V), hidden (1,B,H)).  T=1 reproduces the module's
       forward exactly; T>1 runs the fused decode loop in one pallas_call."""
    V, E, H, Vp, Ep, Hp = dims

    @jax.jit
    def decode(input_ids, hidden, context, prep):
        T, B = input_ids.shape
        Bp = _round_up(B, SUBLANE)
        ids3d = _pad_to(input_ids.astype(jnp.int32), 1, Bp)[:, :, None]   # (T,Bp,1)
        h0 = _pad_to(_pad_to(hidden[0].astype(jnp.float32), 1, Hp), 0, Bp)
        ctx = _pad_to(_pad_to(context[0].astype(jnp.float32), 1, Hp), 0, Bp)

        const = lambda t: (0, 0)     # weights / state: same block every step
        grid_spec = pltpu.PrefetchScalarGridSpec(
            num_scalar_prefetch=0,
            grid=(T,),
            in_specs=[
                pl.BlockSpec((1, Bp, 1), lambda t: (t, 0, 0)),       # ids (per step)
                pl.BlockSpec((Bp, Hp), const),                       # context
                pl.BlockSpec((Bp, Hp), const),                       # h0
                pl.BlockSpec((Vp, Ep), const),                       # emb table
                pl.BlockSpec((Ep + Hp, 3 * Hp), const),              # w_ih (stacked)
                pl.BlockSpec((Hp, 3 * Hp), const),                   # w_hh
                pl.BlockSpec((1, 3 * Hp), const),                    # b_gi (folded)
                pl.BlockSpec((1, Hp), const),                        # b_hn
                pl.BlockSpec((Ep + 2 * Hp, Vp), const),              # w_fc (stacked)
                pl.BlockSpec((1, Vp), const),                        # b_fc
            ],
            out_specs=(
                pl.BlockSpec((1, Bp, Vp), lambda t: (t, 0, 0)),      # per-step logits
                pl.BlockSpec((Bp, Hp), const),                       # final hidden
            ),
            scratch_shapes=[pltpu.VMEM((Bp, Hp), jnp.float32)],      # hidden carry
        )

        preds_p, h_p = pl.pallas_call(
            decoder_decode_kernel,
            out_shape=(jax.ShapeDtypeStruct((T, Bp, Vp), jnp.float32),
                       jax.ShapeDtypeStruct((Bp, Hp), jnp.float32)),
            grid_spec=grid_spec,
            compiler_params=pltpu.CompilerParams(
                dimension_semantics=("arbitrary",),          # sequential carry
                vmem_limit_bytes=32 * 1024 * 1024),
        )(ids3d, ctx, h0, prep["emb_tbl"], prep["w_ih"], prep["w_hh"],
          prep["b_gi"], prep["b_hn"], prep["w_fc"], prep["b_fc"])

        # PyTorch returns (prediction, hidden) with hidden shape (1, B, H).
        return preds_p[:, :B, :V], h_p[:B, :H][None, :, :]

    return decode


# ---------------------------------------------------------------------------
# Parameter init matching PyTorch defaults, and a pure-JAX f32 reference.
# ---------------------------------------------------------------------------
def init_params(key, vocab_size, embed_dim, hidden_size):
    ks = jax.random.split(key, 7)
    k_gru = 1.0 / jnp.sqrt(hidden_size)
    fc_in = embed_dim + 2 * hidden_size
    k_fc = 1.0 / jnp.sqrt(fc_in)
    gru_in = embed_dim + hidden_size
    return {
        # nn.Embedding default init: N(0, 1)
        "embedding": jax.random.normal(ks[0], (vocab_size, embed_dim), jnp.float32),
        # nn.GRU default init: U(-1/sqrt(H), 1/sqrt(H)); gate order [r, z, n]
        "w_ih": jax.random.uniform(ks[1], (3 * hidden_size, gru_in), jnp.float32, -k_gru, k_gru),
        "w_hh": jax.random.uniform(ks[2], (3 * hidden_size, hidden_size), jnp.float32, -k_gru, k_gru),
        "b_ih": jax.random.uniform(ks[3], (3 * hidden_size,), jnp.float32, -k_gru, k_gru),
        "b_hh": jax.random.uniform(ks[4], (3 * hidden_size,), jnp.float32, -k_gru, k_gru),
        # nn.Linear default init: U(-1/sqrt(fan_in), 1/sqrt(fan_in))
        "w_fc": jax.random.uniform(ks[5], (vocab_size, fc_in), jnp.float32, -k_fc, k_fc),
        "b_fc": jax.random.uniform(ks[6], (vocab_size,), jnp.float32, -k_fc, k_fc),
    }


def reference_forward(input_ids, hidden, context, params):
    """Pure-JAX f32 reference matching the PyTorch forward (single step)."""
    emb = params["embedding"][input_ids]                              # (B, E)
    ctx = context[0]
    h = hidden[0]
    H = h.shape[1]
    x = jnp.concatenate([emb, ctx], axis=1)
    gi = x @ params["w_ih"].T + params["b_ih"]
    gh = h @ params["w_hh"].T + params["b_hh"]
    r = jax.nn.sigmoid(gi[:, :H] + gh[:, :H])
    z = jax.nn.sigmoid(gi[:, H:2 * H] + gh[:, H:2 * H])
    n = jnp.tanh(gi[:, 2 * H:] + r * gh[:, 2 * H:])
    h_new = (1.0 - z) * n + z * h
    out = jnp.concatenate([emb, h_new, ctx], axis=1)
    pred = out @ params["w_fc"].T + params["b_fc"]
    return pred, h_new[None]


def reference_decode(ids_tb, hidden, context, params):
    preds = []
    h = hidden
    for t in range(ids_tb.shape[0]):
        p, h = reference_forward(ids_tb[t], h, context, params)
        preds.append(p)
    return jnp.stack(preds, 0), h


if __name__ == "__main__":
    vocab_size, embed_dim, hidden_size, num_layers = 64, 32, 32, 1
    batch, steps = 8, 4

    key = jax.random.PRNGKey(0)
    k_par, k_tok, k_hid, k_ctx = jax.random.split(key, 4)

    params = init_params(k_par, vocab_size, embed_dim, hidden_size)
    ids_tb = jax.random.randint(k_tok, (steps, batch), 0, vocab_size, dtype=jnp.int32)
    hidden = jax.random.normal(k_hid, (num_layers, batch, hidden_size), jnp.float32)
    context = jax.random.normal(k_ctx, (1, batch, hidden_size), jnp.float32)

    # One-time layout / bf16 prep (hoisted out of the per-step path).
    prep, dims = prepare_decoder_params(params)
    decode = make_rnn_decoder_decode(dims)

    # --- Single step: exact module semantics (prediction, hidden).
    pred1_seq, h1 = decode(ids_tb[:1], hidden, context, prep)
    pred1 = pred1_seq[0]
    jax.block_until_ready((pred1, h1))
    assert pred1.shape == (batch, vocab_size)
    assert h1.shape == (num_layers, batch, hidden_size)

    pred_ref, hid_ref = reference_forward(ids_tb[0], hidden, context, params)
    err1 = max(float(jnp.max(jnp.abs(pred1 - pred_ref))),
               float(jnp.max(jnp.abs(h1 - hid_ref))))
    assert err1 < 1e-1, err1   # loose tol: bf16 weights, f32 reference

    # --- Fused multi-step decode: one pallas_call, weights VMEM-resident.
    preds, h_fin = decode(ids_tb, hidden, context, prep)
    jax.block_until_ready((preds, h_fin))
    assert preds.shape == (steps, batch, vocab_size)
    assert h_fin.shape == (num_layers, batch, hidden_size)

    preds_ref, h_fin_ref = reference_decode(ids_tb, hidden, context, params)
    err2 = max(float(jnp.max(jnp.abs(preds - preds_ref))),
               float(jnp.max(jnp.abs(h_fin - h_fin_ref))))
    assert err2 < 1e-1, err2

    print("KERNEL_OK")
</pallas_src>

<mosaic_0001>
module attributes {stable_mosaic.version = 11 : i64} {
  func.func @decoder_decode_kernel(%arg0: i32, %arg1: memref<1x8x1xi32, #tpu.memory_space<vmem>>, %arg2: memref<8x128xf32, #tpu.memory_space<vmem>>, %arg3: memref<8x128xf32, #tpu.memory_space<vmem>>, %arg4: memref<128x128xbf16, #tpu.memory_space<vmem>>, %arg5: memref<256x384xbf16, #tpu.memory_space<vmem>>, %arg6: memref<128x384xbf16, #tpu.memory_space<vmem>>, %arg7: memref<1x384xf32, #tpu.memory_space<vmem>>, %arg8: memref<1x128xf32, #tpu.memory_space<vmem>>, %arg9: memref<384x128xbf16, #tpu.memory_space<vmem>>, %arg10: memref<1x128xf32, #tpu.memory_space<vmem>>, %arg11: memref<1x8x128xf32, #tpu.memory_space<vmem>>, %arg12: memref<8x128xf32, #tpu.memory_space<vmem>>, %arg13: memref<8x128xf32, #tpu.memory_space<vmem>>) attributes {dimension_semantics = [#tpu.dimension_semantics<arbitrary>], iteration_bounds = array<i64: 1>, scalar_prefetch = 0 : i64, scratch_operands = 1 : i64, tpu.core_type = #tpu.core_type<tc>, window_params = [{transform_indices = @transform_0, window_bounds = array<i64: 1, 8, 1>}, {pipeline_mode = #tpu.pipeline_mode<synchronous>, transform_indices = @transform_1, window_bounds = array<i64: 8, 128>}, {pipeline_mode = #tpu.pipeline_mode<synchronous>, transform_indices = @transform_2, window_bounds = array<i64: 8, 128>}, {pipeline_mode = #tpu.pipeline_mode<synchronous>, transform_indices = @transform_3, window_bounds = array<i64: 128, 128>}, {pipeline_mode = #tpu.pipeline_mode<synchronous>, transform_indices = @transform_4, window_bounds = array<i64: 256, 384>}, {pipeline_mode = #tpu.pipeline_mode<synchronous>, transform_indices = @transform_5, window_bounds = array<i64: 128, 384>}, {pipeline_mode = #tpu.pipeline_mode<synchronous>, transform_indices = @transform_6, window_bounds = array<i64: 1, 384>}, {pipeline_mode = #tpu.pipeline_mode<synchronous>, transform_indices = @transform_7, window_bounds = array<i64: 1, 128>}, {pipeline_mode = #tpu.pipeline_mode<synchronous>, transform_indices = @transform_8, window_bounds = array<i64: 384, 128>}, {pipeline_mode = #tpu.pipeline_mode<synchronous>, transform_indices = @transform_9, window_bounds = array<i64: 1, 128>}, {transform_indices = @transform_10, window_bounds = array<i64: 1, 8, 128>}, {pipeline_mode = #tpu.pipeline_mode<synchronous>, transform_indices = @transform_11, window_bounds = array<i64: 8, 128>}]} {
    %c0_i32 = arith.constant 0 : i32
    %0 = arith.cmpi eq, %arg0, %c0_i32 : i32
    %1 = arith.extui %0 : i1 to i32
    %c0_i32_0 = arith.constant 0 : i32
    %2 = arith.cmpi ne, %1, %c0_i32_0 : i32
    scf.if %2 {
      %c0_36 = arith.constant 0 : index
      %c0_37 = arith.constant 0 : index
      %70 = vector.load %arg3[%c0_36, %c0_37] : memref<8x128xf32, #tpu.memory_space<vmem>>, vector<8x128xf32>
      %c0_38 = arith.constant 0 : index
      %c0_39 = arith.constant 0 : index
      %71 = vector.load %arg13[%c0_38, %c0_39] : memref<8x128xf32, #tpu.memory_space<vmem>>, vector<8x128xf32>
      tpu.vector_store %arg13[%c0_38, %c0_39], %70 {strides = array<i32>} : memref<8x128xf32, #tpu.memory_space<vmem>>, vector<8x128xf32>,
    } else {
    }
    %c0 = arith.constant 0 : index
    %c0_1 = arith.constant 0 : index
    %c0_2 = arith.constant 0 : index
    %3 = vector.load %arg1[%c0, %c0_1, %c0_2] : memref<1x8x1xi32, #tpu.memory_space<vmem>>, vector<1x8x1xi32>
    %4 = vector.shape_cast %3 : vector<1x8x1xi32> to vector<8x1xi32>
    %5 = tpu.iota {dimensions = array<i32: 1>} : vector<8x128xi32>
    %6 = vector.broadcast %4 : vector<8x1xi32> to vector<8x128xi32>
    %7 = arith.cmpi eq, %6, %5 : vector<8x128xi32>
    %cst = arith.constant 1.000000e+00 : f32
    %cst_3 = arith.constant 0.000000e+00 : f32
    %8 = vector.broadcast %cst : f32 to vector<8x128xf32>
    %9 = vector.broadcast %cst_3 : f32 to vector<8x128xf32>
    %10 = arith.select %7, %8, %9 : vector<8x128xi1>, vector<8x128xf32>
    %11 = arith.truncf %10 : vector<8x128xf32> to vector<8x128xbf16>
    %c0_4 = arith.constant 0 : index
    %c0_5 = arith.constant 0 : index
    %12 = vector.load %arg4[%c0_4, %c0_5] : memref<128x128xbf16, #tpu.memory_space<vmem>>, vector<128x128xbf16>
    %cst_6 = arith.constant dense<0.000000e+00> : vector<8x128xf32>
    %13 = tpu.matmul %11, %12, %cst_6 {dimension_numbers = #tpu.dot_dimension_numbers<[1], [0], [0], [1], [0, 0, 1, 1], [], []>} : vector<8x128xbf16>, vector<128x128xbf16>, vector<8x128xf32> -> vector<8x128xf32>
    %14 = arith.truncf %13 : vector<8x128xf32> to vector<8x128xbf16>
    %c0_7 = arith.constant 0 : index
    %c0_8 = arith.constant 0 : index
    %15 = vector.load %arg2[%c0_7, %c0_8] : memref<8x128xf32, #tpu.memory_space<vmem>>, vector<8x128xf32>
    %16 = arith.truncf %15 : vector<8x128xf32> to vector<8x128xbf16>
    %c0_9 = arith.constant 0 : index
    %c0_10 = arith.constant 0 : index
    %17 = vector.load %arg13[%c0_9, %c0_10] : memref<8x128xf32, #tpu.memory_space<vmem>>, vector<8x128xf32>
    %18 = arith.truncf %17 : vector<8x128xf32> to vector<8x128xbf16>
    %19 = tpu.concatenate %14, %16 in 1 : vector<8x128xbf16>, vector<8x128xbf16> -> vector<8x256xbf16>
    %c0_11 = arith.constant 0 : index
    %c0_12 = arith.constant 0 : index
    %20 = vector.load %arg5[%c0_11, %c0_12] : memref<256x384xbf16, #tpu.memory_space<vmem>>, vector<256x384xbf16>
    %cst_13 = arith.constant dense<0.000000e+00> : vector<8x384xf32>
    %21 = tpu.matmul %19, %20, %cst_13 {dimension_numbers = #tpu.dot_dimension_numbers<[1], [0], [0], [1], [0, 0, 1, 1], [], []>} : vector<8x256xbf16>, vector<256x384xbf16>, vector<8x384xf32> -> vector<8x384xf32>
    %c0_14 = arith.constant 0 : index
    %c0_15 = arith.constant 0 : index
    %22 = vector.load %arg7[%c0_14, %c0_15] : memref<1x384xf32, #tpu.memory_space<vmem>>, vector<1x384xf32>
    %23 = vector.broadcast %22 : vector<1x384xf32> to vector<8x384xf32>
    %24 = arith.addf %21, %23 : vector<8x384xf32>
    %c0_16 = arith.constant 0 : index
    %c0_17 = arith.constant 0 : index
    %25 = vector.load %arg6[%c0_16, %c0_17] : memref<128x384xbf16, #tpu.memory_space<vmem>>, vector<128x384xbf16>
    %cst_18 = arith.constant dense<0.000000e+00> : vector<8x384xf32>
    %26 = tpu.matmul %18, %25, %cst_18 {dimension_numbers = #tpu.dot_dimension_numbers<[1], [0], [0], [1], [0, 0, 1, 1], [], []>} : vector<8x128xbf16>, vector<128x384xbf16>, vector<8x384xf32> -> vector<8x384xf32>
    %27 = vector.extract_strided_slice %24 {offsets = [0, 0], sizes = [8, 128], strides = [1, 1]} : vector<8x384xf32> to vector<8x128xf32>
    %28 = vector.extract_strided_slice %26 {offsets = [0, 0], sizes = [8, 128], strides = [1, 1]} : vector<8x384xf32> to vector<8x128xf32>
    %29 = arith.addf %27, %28 : vector<8x128xf32>
    %30 = arith.negf %29 : vector<8x128xf32>
    %31 = math.exp %30 : vector<8x128xf32>
    %cst_19 = arith.constant 1.000000e+00 : f32
    %32 = vector.broadcast %cst_19 : f32 to vector<8x128xf32>
    %33 = arith.addf %32, %31 : vector<8x128xf32>
    %34 = arith.divf %32, %33 : vector<8x128xf32>
    %35 = vector.extract_strided_slice %24 {offsets = [0, 128], sizes = [8, 128], strides = [1, 1]} : vector<8x384xf32> to vector<8x128xf32>
    %36 = vector.extract_strided_slice %26 {offsets = [0, 128], sizes = [8, 128], strides = [1, 1]} : vector<8x384xf32> to vector<8x128xf32>
    %37 = arith.addf %35, %36 : vector<8x128xf32>
    %38 = arith.negf %37 : vector<8x128xf32>
    %39 = math.exp %38 : vector<8x128xf32>
    %cst_20 = arith.constant 1.000000e+00 : f32
    %40 = vector.broadcast %cst_20 : f32 to vector<8x128xf32>
    %41 = arith.addf %40, %39 : vector<8x128xf32>
    %42 = arith.divf %40, %41 : vector<8x128xf32>
    %43 = vector.extract_strided_slice %24 {offsets = [0, 256], sizes = [8, 128], strides = [1, 1]} : vector<8x384xf32> to vector<8x128xf32>
    %44 = vector.extract_strided_slice %26 {offsets = [0, 256], sizes = [8, 128], strides = [1, 1]} : vector<8x384xf32> to vector<8x128xf32>
    %c0_21 = arith.constant 0 : index
    %c0_22 = arith.constant 0 : index
    %45 = vector.load %arg8[%c0_21, %c0_22] : memref<1x128xf32, #tpu.memory_space<vmem>>, vector<1x128xf32>
    %46 = vector.broadcast %45 : vector<1x128xf32> to vector<8x128xf32>
    %47 = arith.addf %44, %46 : vector<8x128xf32>
    %48 = arith.mulf %34, %47 : vector<8x128xf32>
    %49 = arith.addf %43, %48 : vector<8x128xf32>
    %50 = math.tanh %49 : vector<8x128xf32>
    %cst_23 = arith.constant 1.000000e+00 : f32
    %51 = vector.broadcast %cst_23 : f32 to vector<8x128xf32>
    %52 = arith.subf %51, %42 : vector<8x128xf32>
    %53 = arith.mulf %52, %50 : vector<8x128xf32>
    %54 = arith.mulf %42, %17 : vector<8x128xf32>
    %55 = arith.addf %53, %54 : vector<8x128xf32>
    %c0_24 = arith.constant 0 : index
    %c0_25 = arith.constant 0 : index
    %56 = vector.load %arg13[%c0_24, %c0_25] : memref<8x128xf32, #tpu.memory_space<vmem>>, vector<8x128xf32>
    tpu.vector_store %arg13[%c0_24, %c0_25], %55 {strides = array<i32>} : memref<8x128xf32, #tpu.memory_space<vmem>>, vector<8x128xf32>,
    %57 = arith.truncf %55 : vector<8x128xf32> to vector<8x128xbf16>
    %58 = tpu.concatenate %14, %57, %16 in 1 : vector<8x128xbf16>, vector<8x128xbf16>, vector<8x128xbf16> -> vector<8x384xbf16>
    %c0_26 = arith.constant 0 : index
    %c0_27 = arith.constant 0 : index
    %59 = vector.load %arg9[%c0_26, %c0_27] : memref<384x128xbf16, #tpu.memory_space<vmem>>, vector<384x128xbf16>
    %cst_28 = arith.constant dense<0.000000e+00> : vector<8x128xf32>
    %60 = tpu.matmul %58, %59, %cst_28 {dimension_numbers = #tpu.dot_dimension_numbers<[1], [0], [0], [1], [0, 0, 1, 1], [], []>} : vector<8x384xbf16>, vector<384x128xbf16>, vector<8x128xf32> -> vector<8x128xf32>
    %c0_29 = arith.constant 0 : index
    %c0_30 = arith.constant 0 : index
    %61 = vector.load %arg10[%c0_29, %c0_30] : memref<1x128xf32, #tpu.memory_space<vmem>>, vector<1x128xf32>
    %62 = vector.broadcast %61 : vector<1x128xf32> to vector<8x128xf32>
    %63 = arith.addf %60, %62 : vector<8x128xf32>
    %c0_31 = arith.constant 0 : index
    %c0_32 = arith.constant 0 : index
    %c0_33 = arith.constant 0 : index
    %64 = vector.load %arg11[%c0_31, %c0_32, %c0_33] : memref<1x8x128xf32, #tpu.memory_space<vmem>>, vector<1x8x128xf32>
    %65 = vector.shape_cast %64 : vector<1x8x128xf32> to vector<8x128xf32>
    %66 = vector.shape_cast %63 : vector<8x128xf32> to vector<1x8x128xf32>
    tpu.vector_store %arg11[%c0_31, %c0_32, %c0_33], %66 {strides = array<i32>} : memref<1x8x128xf32, #tpu.memory_space<vmem>>, vector<1x8x128xf32>,
    %c0_i32_34 = arith.constant 0 : i32
    %67 = arith.cmpi eq, %arg0, %c0_i32_34 : i32
    %68 = arith.extui %67 : i1 to i32
    %c0_i32_35 = arith.constant 0 : i32
    %69 = arith.cmpi ne, %68, %c0_i32_35 : i32
    scf.if %69 {
      %c0_36 = arith.constant 0 : index
      %c0_37 = arith.constant 0 : index
      %70 = vector.load %arg12[%c0_36, %c0_37] : memref<8x128xf32, #tpu.memory_space<vmem>>, vector<8x128xf32>
      tpu.vector_store %arg12[%c0_36, %c0_37], %55 {strides = array<i32>} : memref<8x128xf32, #tpu.memory_space<vmem>>, vector<8x128xf32>,
    } else {
    }
    return
  }
  func.func @transform_0(%arg0: i32) -> (i32, i32, i32) {
    %c0_i32 = arith.constant 0 : i32
    %c0_i32_0 = arith.constant 0 : i32
    %c0_i32_1 = arith.constant 0 : i32
    return %arg0, %c0_i32, %c0_i32_0 : i32, i32, i32
  }
  func.func @transform_1(%arg0: i32) -> (i32, i32) {
    %c0_i32 = arith.constant 0 : i32
    %c0_i32_0 = arith.constant 0 : i32
    %c0_i32_1 = arith.constant 0 : i32
    return %c0_i32, %c0_i32_0 : i32, i32
  }
  func.func @transform_2(%arg0: i32) -> (i32, i32) {
    %c0_i32 = arith.constant 0 : i32
    %c0_i32_0 = arith.constant 0 : i32
    %c0_i32_1 = arith.constant 0 : i32
    return %c0_i32, %c0_i32_0 : i32, i32
  }
  func.func @transform_3(%arg0: i32) -> (i32, i32) {
    %c0_i32 = arith.constant 0 : i32
    %c0_i32_0 = arith.constant 0 : i32
    %c0_i32_1 = arith.constant 0 : i32
    return %c0_i32, %c0_i32_0 : i32, i32
  }
  func.func @transform_4(%arg0: i32) -> (i32, i32) {
    %c0_i32 = arith.constant 0 : i32
    %c0_i32_0 = arith.constant 0 : i32
    %c0_i32_1 = arith.constant 0 : i32
    return %c0_i32, %c0_i32_0 : i32, i32
  }
  func.func @transform_5(%arg0: i32) -> (i32, i32) {
    %c0_i32 = arith.constant 0 : i32
    %c0_i32_0 = arith.constant 0 : i32
    %c0_i32_1 = arith.constant 0 : i32
    return %c0_i32, %c0_i32_0 : i32, i32
  }
  func.func @transform_6(%arg0: i32) -> (i32, i32) {
    %c0_i32 = arith.constant 0 : i32
    %c0_i32_0 = arith.constant 0 : i32
    %c0_i32_1 = arith.constant 0 : i32
    return %c0_i32, %c0_i32_0 : i32, i32
  }
  func.func @transform_7(%arg0: i32) -> (i32, i32) {
    %c0_i32 = arith.constant 0 : i32
    %c0_i32_0 = arith.constant 0 : i32
    %c0_i32_1 = arith.constant 0 : i32
    return %c0_i32, %c0_i32_0 : i32, i32
  }
  func.func @transform_8(%arg0: i32) -> (i32, i32) {
    %c0_i32 = arith.constant 0 : i32
    %c0_i32_0 = arith.constant 0 : i32
    %c0_i32_1 = arith.constant 0 : i32
    return %c0_i32, %c0_i32_0 : i32, i32
  }
  func.func @transform_9(%arg0: i32) -> (i32, i32) {
    %c0_i32 = arith.constant 0 : i32
    %c0_i32_0 = arith.constant 0 : i32
    %c0_i32_1 = arith.constant 0 : i32
    return %c0_i32, %c0_i32_0 : i32, i32
  }
  func.func @transform_10(%arg0: i32) -> (i32, i32, i32) {
    %c0_i32 = arith.constant 0 : i32
    %c0_i32_0 = arith.constant 0 : i32
    %c0_i32_1 = arith.constant 0 : i32
    return %arg0, %c0_i32, %c0_i32_0 : i32, i32, i32
  }
  func.func @transform_11(%arg0: i32) -> (i32, i32) {
    %c0_i32 = arith.constant 0 : i32
    %c0_i32_0 = arith.constant 0 : i32
    %c0_i32_1 = arith.constant 0 : i32
    return %c0_i32, %c0_i32_0 : i32, i32
  }
}

</mosaic_0001>

<bundles_post_ra>
// kernel: decode.1
= control target key start
LH: loop header
LB: loop body
LE: loop exit
PB: predicated region body
PF: predicated region fallthrough
CT: control target
= control target key end

     0   :  { %17 = vsyncpa [#allocation4], 0  ;;  %s1878_s0 = inlined_call_operand.vmem [shape: s32[1,8,1], index: 0, kind: input, shape index: {}]   ;;  %s1879_s1 = inlined_call_operand.vmem [shape: f32[8,128], index: 1, kind: input, shape index: {}]   ;;  %s1880_s2 = inlined_call_operand.vmem [shape: f32[8,128], index: 2, kind: input, shape index: {}]   ;;  %s1881_s3 = inlined_call_operand.hbm [shape: bf16[128,128], index: 3, kind: input, shape index: {}]   ;;  %s1882_s4 = inlined_call_operand.hbm [shape: bf16[256,384], index: 4, kind: input, shape index: {}]   ;;  %s1883_s5 = inlined_call_operand.hbm [shape: bf16[128,384], index: 5, kind: input, shape index: {}]   ;;  %s1884_s6 = inlined_call_operand.vmem [shape: f32[1,384], index: 6, kind: input, shape index: {}]   ;;  %s1885_s7 = inlined_call_operand.vmem [shape: f32[1,128], index: 7, kind: input, shape index: {}]   ;;  %s1886_s8 = inlined_call_operand.hbm [shape: bf16[384,128], index: 8, kind: input, shape index: {}]   ;;  %s1887_s9 = inlined_call_operand.vmem [shape: f32[1,128], index: 9, kind: input, shape index: {}]   ;;  %s1888_s10 = inlined_call_operand.hbm [shape: f32[1,8,128], index: 10, kind: output, shape index: {0}]   ;;  %s1889_s11 = inlined_call_operand.vmem [shape: f32[8,128], index: 11, kind: output, shape index: {1}]  }
   0x1   :  { %18 = vsyncpa [#allocation7], 0 }
   0x2   :  { %19 = vsyncpa [#allocation10], 0 }
   0x3   :  { %20 = vsyncpa [#allocation5], 0  ;;  %s1714_s17 = smov [#allocation6]  }
   0x4   :  { %s44_s18 = sshll.u32 %s1714_s17, 4  ;;  %s45_s18 = int_to_ptr.vmem [resolvable:$true] %s44_s18 }
   0x5   :  { %s1614_s19 = scalar_lea.vmem %s45_s18, 6144  ;;  %p1619_p1 = scmp.lt.s32.totalorder %s45_s18, %s45_s18 }
   0x6   :  { %p1615_p0 = scmp.ne.s32.totalorder %s45_s18, %s1614_s19  ;;  %p1620_p2 = scmp.lt.s32.totalorder %s1614_s19, %s1614_s19 }
   0x8   :  { %p1621_p3 = por %p1620_p2, %p1619_p1 }
   0xa   :  { %p1622_p4 = pnand %p1621_p3, %p1615_p0 }
   0xc   :  { %1625 = shalt.err (!%p1622_p4)
}
   0xd   :  { %s1715_s20 = smov 192   ;;  %s1716_s21 = smov 12  }
   0xe   :  { %50 = dma.hbm_to_vmem [thread:$0]  %s1882_s4, 6144, %s45_s18, [#allocation7], %s1715_s20, %s1715_s20, %s1716_s21  }
   0xf   :  { %s1717_s24 = smov [#allocation3]  }
  0x10   :  { %s32_s25 = sshll.u32 %s1717_s24, 4  ;;  %s33_s25 = int_to_ptr.vmem [resolvable:$true] %s32_s25 }
  0x11   :  { %s1634_s26 = scalar_lea.vmem %s33_s25, 1024  ;;  %p1639_p6 = scmp.lt.s32.totalorder %s33_s25, %s33_s25 }
  0x12   :  { %p1635_p5 = scmp.ne.s32.totalorder %s33_s25, %s1634_s26  ;;  %p1640_p7 = scmp.lt.s32.totalorder %s1634_s26, %s1634_s26 }
  0x14   :  { %p1641_p8 = por %p1640_p7, %p1639_p6 }
  0x16   :  { %p1642_p9 = pnand %p1641_p8, %p1635_p5 }
  0x18   :  { %1645 = shalt.err (!%p1642_p9)
}
  0x19   :  { %s1718_s27 = smov 64   ;;  %s1719_s28 = smov 4  }
  0x1a   :  { %38 = dma.hbm_to_vmem [thread:$0]  %s1881_s3, 1024, %s33_s25, [#allocation4], %s1718_s27, %s1718_s27, %s1719_s28  }
  0x1b   :  { %s1720_s12 = smov [#allocation8]   ;;  %s1721_s14 = smov [#allocation9]  }
  0x1c   :  { %s56_s13 = sshll.u32 %s1720_s12, 4  ;;  %s72_s4 = sshll.u32 %s1721_s14, 4  ;;  %s57_s13 = int_to_ptr.vmem [resolvable:$true] %s56_s13  ;;  %s73_s4 = int_to_ptr.vmem [resolvable:$true] %s72_s4 }
  0x1d   :  { %s1654_s15 = scalar_lea.vmem %s57_s13, 3072  ;;  %p1659_p11 = scmp.lt.s32.totalorder %s57_s13, %s57_s13 }
  0x1e   :  { %p1655_p10 = scmp.ne.s32.totalorder %s57_s13, %s1654_s15  ;;  %p1660_p12 = scmp.lt.s32.totalorder %s1654_s15, %s1654_s15 }
  0x20   :  { %p1661_p13 = por %p1660_p12, %p1659_p11 }
  0x22   :  { %p1662_p0 = pnand %p1661_p13, %p1655_p10 }
  0x24   :  { %1665 = shalt.err (!%p1662_p0)
}
  0x25   :  { %62 = dma.hbm_to_vmem [thread:$0]  %s1883_s5, 3072, %s57_s13, [#allocation7], %s1715_s20, %s1715_s20, %s1716_s21  }
  0x26   :  { %s1674_s3 = scalar_lea.vmem %s73_s4, 3072  ;;  %p1679_p2 = scmp.lt.s32.totalorder %s73_s4, %s73_s4 }
  0x27   :  { %p1675_p1 = scmp.ne.s32.totalorder %s73_s4, %s1674_s3  ;;  %p1680_p3 = scmp.lt.s32.totalorder %s1674_s3, %s1674_s3 }
  0x29   :  { %p1681_p4 = por %p1680_p3, %p1679_p2 }
  0x2b   :  { %p1682_p5 = pnand %p1681_p4, %p1675_p1 }
  0x2d   :  { %1685 = shalt.err (!%p1682_p5)
}
  0x2e   :  { %78 = dma.hbm_to_vmem [thread:$0]  %s1886_s8, 3072, %s73_s4, [#allocation10], %s1718_s27, %s1718_s27, %s1719_s28  }
  0x2f   :  { %1706 = dma.done.wait [#allocation4], 1024  }
  0x30   :  { %1707 = vsyncadd [#allocation4], 4294966272 }
  0x31   :  { %1708 = dma.done.wait [#allocation7], 9216  }
  0x32   :  { %1709 = vsyncadd [#allocation7], 4294958080 }
  0x33   :  { %1710 = dma.done.wait [#allocation10], 3072  }
  0x34   :  { %1711 = vsyncadd [#allocation10], 4294964224  ;;  %v1722_v0 = vmov 0   ;;  %v1723_v1 = vmov 0.0   ;;  %vm1724_vm0 = vmmov 0   ;;  %v100_v2 = vld [vmem:[%s1878_s0] sm:$0xff]  ;;  %v101_v43 = vlaneseq }
  0x35   :  { %1467 = vset.pattern.permute.xlu0 %v1722_v0  ;;  %1394 = vmatprep.subr.bf16.mxu0 %v1723_v1  ;;  %v1468_v3 = vld [vmem:[#allocation3 + $0x38] sm:$0xff]   ;;  %v1469_v4 = vld [vmem:[#allocation3 + $0x30] sm:$0xff]   ;;  %v1470_v5 = vld [vmem:[#allocation3 + $0x28] sm:$0xff]   ;;  %v1725_v48 = vmov 1.0|1.0   ;;  %s1726_s27 = smov [#allocation11]  }
  0x36   :  { %1410 = vmatprep.mubr.msk.bf16.mxu0 %vm1724_vm0, %v1723_v1  ;;  %104 = vperm.xlu0 %1467, %v100_v2   ;;  %v1476_v6 = vld [vmem:[#allocation6 + $0xac] ss:$12 sps:$4 sm:$0xff]   ;;  %v1478_v7 = vld [vmem:[#allocation6 + $0xa8] ss:$12 sps:$4 sm:$0xff]   ;;  %v1471_v9 = vld [vmem:[#allocation3 + $0x20] sm:$0xff]   ;;  %v102_v44 = vand.u32 127, %v101_v43 }
  0x37   :  { %1395 = vmatpush3.bf16.msra.mxu0 %v1468_v3  ;;  %v1479_v8 = vld [vmem:[#allocation6 + $0x94] ss:$12 sps:$4 sm:$0xff]   ;;  %555 = vmatprep.subr.bf16.mxu1 %v1476_v6  ;;  %v1481_v10 = vld [vmem:[#allocation6 + $0x90] ss:$12 sps:$4 sm:$0xff]   ;;  %v1484_v13 = vld [vmem:[#allocation6 + $0x78] ss:$12 sps:$4 sm:$0xff]  }
  0x38   :  { %1396 = vmatprep.subr.bf16.mxu0 %v1723_v1  ;;  %556 = vmatpush1.bf16.msra.mxu1 %v1478_v7  ;;  %v1482_v11 = vld [vmem:[#allocation6 + $0x7c] ss:$12 sps:$4 sm:$0xff]   ;;  %v1485_v14 = vld [vmem:[#allocation6 + $0x64] ss:$12 sps:$4 sm:$0xff]   ;;  %v1487_v16 = vld [vmem:[#allocation6 + $0x60] ss:$12 sps:$4 sm:$0xff]  }
  0x39   :  { %557 = vmatprep.subr.bf16.mxu1 %v1479_v8  ;;  %v1472_v12 = vld [vmem:[#allocation3 + $0x18] sm:$0xff]   ;;  %v1473_v15 = vld [vmem:[#allocation3 + $0x10] sm:$0xff]   ;;  %v1474_v18 = vld [vmem:[#allocation3 + $0x8] sm:$0xff]   ;;  %s1198_s28 = sshll.u32 %s1726_s27, 4  ;;  %s1199_s28 = int_to_ptr.vmem [resolvable:$true] %s1198_s28 }
  0x3a   :  { %v1488_v17 = vld [vmem:[#allocation6 + $0x4c] ss:$12 sps:$4 sm:$0xff]   ;;  %v1490_v19 = vld [vmem:[#allocation6 + $0x48] ss:$12 sps:$4 sm:$0xff]   ;;  %v1475_v21 = vld [vmem:[#allocation3] sm:$0xff]   ;;  %p1691_p7 = scmp.lt.s32.totalorder %s1199_s28, %s1199_s28 }
  0x3b   :  { %1397 = vmatpush3.bf16.msra.mxu0 %v1469_v4  ;;  %v1491_v20 = vld [vmem:[#allocation6 + $0x34] ss:$12 sps:$4 sm:$0xff]   ;;  %v1493_v22 = vld [vmem:[#allocation6 + $0x30] ss:$12 sps:$4 sm:$0xff]   ;;  %v1496_v25 = vld [vmem:[#allocation6 + $0x18] ss:$12 sps:$4 sm:$0xff]  }
  0x3c   :  { %1398 = vmatprep.subr.bf16.mxu0 %v1723_v1  ;;  %558 = vmatpush1.bf16.msra.mxu1 %v1481_v10  ;;  %v1500_v23 = vld [vmem:[#allocation6 + $0x170] ss:$12 sps:$4 sm:$0xff]   ;;  %v1499_v27 = vld [vmem:[#allocation6] ss:$12 sps:$4 sm:$0xff]   ;;  %v1504_v29 = vld [vmem:[#allocation6 + $0x168] ss:$12 sps:$4 sm:$0xff]  }
  0x3d   :  { %559 = vmatprep.subr.bf16.mxu1 %v1482_v11  ;;  %v1494_v24 = vld [vmem:[#allocation6 + $0x1c] ss:$12 sps:$4 sm:$0xff]   ;;  %v1497_v26 = vld [vmem:[#allocation6 + $0x4] ss:$12 sps:$4 sm:$0xff]   ;;  %v1501_v28 = vld [vmem:[#allocation6 + $0x16c] ss:$12 sps:$4 sm:$0xff]  }
  0x3e   :  { %v1506_v30 = vld [vmem:[#allocation6 + $0x154] ss:$12 sps:$4 sm:$0xff]   ;;  %v1509_v31 = vld [vmem:[#allocation6 + $0x150] ss:$12 sps:$4 sm:$0xff]   ;;  %v1514_v33 = vld [vmem:[#allocation6 + $0x138] ss:$12 sps:$4 sm:$0xff]  }
  0x3f   :  { %1399 = vmatpush3.bf16.msra.mxu0 %v1470_v5  ;;  %v1511_v32 = vld [vmem:[#allocation6 + $0x13c] ss:$12 sps:$4 sm:$0xff]   ;;  %v1516_v34 = vld [vmem:[#allocation6 + $0x124] ss:$12 sps:$4 sm:$0xff]   ;;  %v1519_v35 = vld [vmem:[#allocation6 + $0x120] ss:$12 sps:$4 sm:$0xff]  }
  0x40   :  { %1400 = vmatprep.subr.bf16.mxu0 %v1723_v1  ;;  %560 = vmatpush1.bf16.msra.mxu1 %v1484_v13  ;;  %v1521_v36 = vld [vmem:[#allocation6 + $0x10c] ss:$12 sps:$4 sm:$0xff]   ;;  %v1524_v37 = vld [vmem:[#allocation6 + $0x108] ss:$12 sps:$4 sm:$0xff]   ;;  %v1529_v39 = vld [vmem:[#allocation6 + $0xf0] ss:$12 sps:$4 sm:$0xff]  }
  0x41   :  { %561 = vmatprep.subr.bf16.mxu1 %v1485_v14  ;;  %v1526_v38 = vld [vmem:[#allocation6 + $0xf4] ss:$12 sps:$4 sm:$0xff]   ;;  %v1531_v40 = vld [vmem:[#allocation6 + $0xdc] ss:$12 sps:$4 sm:$0xff]   ;;  %v1534_v41 = vld [vmem:[#allocation6 + $0xd8] ss:$12 sps:$4 sm:$0xff]  }
  0x42   :  { %v1536_v42 = vld [vmem:[#allocation6 + $0xc4] ss:$12 sps:$4 sm:$0xff]   ;;  %v1510_v50 = vld [vmem:[#allocation6 + $0x140] ss:$12 sps:$4 sm:$0xff]   ;;  %v1515_v52 = vld [vmem:[#allocation6 + $0x128] ss:$12 sps:$4 sm:$0xff]  }
  0x43   :  { %1401 = vmatpush3.bf16.msra.mxu0 %v1471_v9  ;;  %v1503_v46 = vld [vmem:[#allocation6 + $0xb0] ss:$12 sps:$4 sm:$0xff]   ;;  %v1505_v47 = vld [vmem:[#allocation6 + $0x158] ss:$12 sps:$4 sm:$0xff]   ;;  %v1513_v51 = vld [vmem:[#allocation6 + $0x80] ss:$12 sps:$4 sm:$0xff]  }
  0x44   :  { %1402 = vmatprep.subr.bf16.mxu0 %v1723_v1  ;;  %562 = vmatpush1.bf16.msra.mxu1 %v1487_v16  ;;  %v1508_v49 = vld [vmem:[#allocation6 + $0x98] ss:$12 sps:$4 sm:$0xff]   ;;  %v1518_v53 = vld [vmem:[#allocation6 + $0x68] ss:$12 sps:$4 sm:$0xff]   ;;  %v1520_v54 = vld [vmem:[#allocation6 + $0x110] ss:$12 sps:$4 sm:$0xff]  }
  0x45   :  { %563 = vmatprep.subr.bf16.mxu1 %v1488_v17  ;;  %v1523_v55 = vld [vmem:[#allocation6 + $0x50] ss:$12 sps:$4 sm:$0xff]   ;;  %v1525_v56 = vld [vmem:[#allocation6 + $0xf8] ss:$12 sps:$4 sm:$0xff]   ;;  %v1530_v58 = vld [vmem:[#allocation6 + $0xe0] ss:$12 sps:$4 sm:$0xff]  }
  0x46   :  { %v1528_v57 = vld [vmem:[#allocation6 + $0x38] ss:$12 sps:$4 sm:$0xff]   ;;  %v1533_v59 = vld [vmem:[#allocation6 + $0x20] ss:$12 sps:$4 sm:$0xff]   ;;  %v1535_v60 = vld [vmem:[#allocation6 + $0xc8] ss:$12 sps:$4 sm:$0xff]  }
  0x47   :  { %1403 = vmatpush3.bf16.msra.mxu0 %v1472_v12  ;;  %v1538_v61 = vld [vmem:[#allocation6 + $0x8] ss:$12 sps:$4 sm:$0xff]   ;;  %v1539_v62 = vld [vmem:[#allocation6 + $0xc0] ss:$12 sps:$4 sm:$0xff]   ;;  %v1561_v6 = vld [vmem:[#allocation8 + $0xb0] ss:$12 sps:$4 sm:$0xff]  }
  0x48   :  { %1404 = vmatprep.subr.bf16.mxu0 %v1723_v1  ;;  %564 = vmatpush1.bf16.msra.mxu1 %v1490_v19  ;;  %v214_v63 = vld [vmem:[%s1879_s1] sm:$0xff]  ;;  %v1542_v3 = vld [vmem:[#allocation8 + $0xac] ss:$12 sps:$4 sm:$0xff]   ;;  %v1540_v5 = vld [vmem:[#allocation8 + $0xa8] ss:$12 sps:$4 sm:$0xff]  }
  0x49   :  { %565 = vmatprep.subr.bf16.mxu1 %v1491_v20  ;;  %v1823_v2 = vpack.c.bf16 %v214_v63, %v214_v63  ;;  %v1545_v8 = vld [vmem:[#allocation8 + $0x94] ss:$12 sps:$4 sm:$0xff]   ;;  %v1543_v11 = vld [vmem:[#allocation8 + $0x90] ss:$12 sps:$4 sm:$0xff]   ;;  %v1565_v12 = vld [vmem:[#allocation8 + $0x98] ss:$12 sps:$4 sm:$0xff]  }
  0x4a   :  { %v1548_v13 = vld [vmem:[#allocation8 + $0x7c] ss:$12 sps:$4 sm:$0xff]   ;;  %v1566_v16 = vld [vmem:[#allocation8 + $0x80] ss:$12 sps:$4 sm:$0xff]   ;;  %v1551_v17 = vld [vmem:[#allocation8 + $0x64] ss:$12 sps:$4 sm:$0xff]  }
  0x4b   :  { %1405 = vmatpush3.bf16.msra.mxu0 %v1473_v15  ;;  %587 = vmatprep.mubr.bf16.mxu1 %v1823_v2  ;;  %v1546_v15 = vld [vmem:[#allocation8 + $0x78] ss:$12 sps:$4 sm:$0xff]   ;;  %v1567_v19 = vld [vmem:[#allocation8 + $0x68] ss:$12 sps:$4 sm:$0xff]  }
  0x4c   :  { %1406 = vmatprep.subr.bf16.mxu0 %v1723_v1  ;;  %566 = vmatpush1.bf16.msra.mxu1 %v1493_v22  ;;  %v1554_v20 = vld [vmem:[#allocation8 + $0x4c] ss:$12 sps:$4 sm:$0xff]   ;;  %v1557_v22 = vld [vmem:[#allocation8 + $0x34] ss:$12 sps:$4 sm:$0xff]  }
  0x4d   :  { %567 = vmatprep.subr.bf16.mxu1 %v1494_v24  ;;  %v1569_v24 = vld [vmem:[#allocation8 + $0x38] ss:$12 sps:$4 sm:$0xff]  }
  0x4f   :  { %1407 = vmatpush3.bf16.msra.mxu0 %v1474_v18  ;;  %v1549_v18 = vld [vmem:[#allocation8 + $0x60] ss:$12 sps:$4 sm:$0xff]  }
  0x50   :  { %1408 = vmatprep.subr.bf16.mxu0 %v1723_v1  ;;  %568 = vmatpush1.bf16.msra.mxu1 %v1496_v25  ;;  %v1560_v25 = vld [vmem:[#allocation8 + $0x1c] ss:$12 sps:$4 sm:$0xff]  }
  0x51   :  { %569 = vmatprep.subr.bf16.mxu1 %v1497_v26  ;;  %v1558_v26 = vld [vmem:[#allocation8 + $0x18] ss:$12 sps:$4 sm:$0xff]  }
  0x53   :  { %1409 = vmatpush3.bf16.msra.mxu0 %v1475_v21  ;;  %v1568_v21 = vld [vmem:[#allocation8 + $0x50] ss:$12 sps:$4 sm:$0xff]  }
  0x54   :  { %1332 = vmatprep.subr.bf16.mxu0 %v1500_v23  ;;  %570 = vmatpush1.bf16.msra.mxu1 %v1499_v27  ;;  %v1555_v23 = vld [vmem:[#allocation8 + $0x30] ss:$12 sps:$4 sm:$0xff]   ;;  %v1570_v27 = vld [vmem:[#allocation8 + $0x20] ss:$12 sps:$4 sm:$0xff]  }
  0x55   :  { %571 = vmatprep.subr.bf16.mxu1 %v1501_v28  ;;  %v1564_v28 = vld [vmem:[#allocation8 + $0x4] ss:$12 sps:$4 sm:$0xff]  }
  0x58   :  { %572 = vmatpush2.bf16.msra.mxu1 %v1504_v29  ;;  %v1562_v29 = vld [vmem:[#allocation8] ss:$12 sps:$4 sm:$0xff]  }
  0x59   :  { %573 = vmatprep.subr.bf16.mxu1 %v1506_v30  ;;  %v1844_v30 = vld [vmem:[%s1880_s2] sm:$0xff] }
  0x5c   :  { %574 = vmatpush2.bf16.msra.mxu1 %v1509_v31  ;;  %v1571_v31 = vld [vmem:[#allocation8 + $0x8] ss:$12 sps:$4 sm:$0xff]  }
  0x5d   :  { %575 = vmatprep.subr.bf16.mxu1 %v1511_v32  ;;  %v217_v32 = vpack.c.bf16 %v1844_v30, %v1844_v30 }
  0x60   :  { %576 = vmatpush2.bf16.msra.mxu1 %v1514_v33  ;;  %v1572_v33 = vld [vmem:[#allocation9 + $0xb8] sm:$0xff]  }
  0x61   :  { %577 = vmatprep.subr.bf16.mxu1 %v1516_v34  ;;  %v1573_v34 = vld [vmem:[#allocation9 + $0x78] sm:$0xff]  }
  0x64   :  { %578 = vmatpush2.bf16.msra.mxu1 %v1519_v35  ;;  %v1574_v35 = vld [vmem:[#allocation9 + $0x38] sm:$0xff]  }
  0x65   :  { %579 = vmatprep.subr.bf16.mxu1 %v1521_v36  ;;  %v1575_v36 = vld [vmem:[#allocation9 + $0xb0] sm:$0xff]  }
  0x68   :  { %580 = vmatpush2.bf16.msra.mxu1 %v1524_v37  ;;  %v1576_v37 = vld [vmem:[#allocation9 + $0x70] sm:$0xff]  }
  0x69   :  { %581 = vmatprep.subr.bf16.mxu1 %v1526_v38  ;;  %v1577_v38 = vld [vmem:[#allocation9 + $0x30] sm:$0xff]  }
  0x6c   :  { %582 = vmatpush2.bf16.msra.mxu1 %v1529_v39  ;;  %v1578_v39 = vld [vmem:[#allocation9 + $0xa8] sm:$0xff]  }
  0x6d   :  { %583 = vmatprep.subr.bf16.mxu1 %v1531_v40  ;;  %v1579_v40 = vld [vmem:[#allocation9 + $0x68] sm:$0xff]  }
  0x70   :  { %584 = vmatpush2.bf16.msra.mxu1 %v1534_v41  ;;  %v1580_v41 = vld [vmem:[#allocation9 + $0x28] sm:$0xff]  }
  0x71   :  { %585 = vmatprep.subr.bf16.mxu1 %v1536_v42  ;;  %v1581_v42 = vld [vmem:[#allocation9 + $0xa0] sm:$0xff]  }
  0x74   :  { %586 = vmatpush2.bf16.msra.mxu1 %v1539_v62 }
  0x75   :  { %1414 = vmatprep.subr.bf16.mxu1 %v1723_v1 }
  0xb1   :  { %v105_v45 = vpop.permute.xlu0 %104 }
  0xb2   :  { %vm106_vm1 = vcmp.eq.s32.totalorder %v105_v45, %v102_v44  ;;  %v1582_v44 = vld [vmem:[#allocation9 + $0x60] sm:$0xff]  }
  0xb3   :  { %vm1221_vm2 = vmpackc.low %vm106_vm1, %vm106_vm1  ;;  %v1583_v45 = vld [vmem:[#allocation9 + $0x20] sm:$0xff]  }
  0xb4   :  { %1411 = vmatmul.mubr.msk.bf16.vlgmr.msra.gmra.mxu0 %vm1221_vm2, %v1725_v48  ;;  %v1586_v48 = vld [vmem:[#allocation9 + $0x18] sm:$0xff]  }
  0xb5   :  { %1333 = vmatpush3.bf16.msra.mxu0 %v1503_v46  ;;  %628 = vmatprep.mubr.bf16.mxu0 %v1823_v2  ;;  %v1584_v46 = vld [vmem:[#allocation9 + $0x98] sm:$0xff]  }
  0xb6   :  { %1334 = vmatprep.subr.bf16.mxu0 %v1505_v47  ;;  %v1585_v47 = vld [vmem:[#allocation9 + $0x58] sm:$0xff]  }
  0xb9   :  { %1335 = vmatpush3.bf16.msra.mxu0 %v1508_v49  ;;  %v1588_v49 = vld [vmem:[#allocation9 + $0x50] sm:$0xff]  }
  0xba   :  { %1336 = vmatprep.subr.bf16.mxu0 %v1510_v50  ;;  %v1587_v50 = vld [vmem:[#allocation9 + $0x90] sm:$0xff]  }
  0xbd   :  { %1337 = vmatpush3.bf16.msra.mxu0 %v1513_v51  ;;  %v1589_v51 = vld [vmem:[#allocation9 + $0x10] sm:$0xff]  }
  0xbe   :  { %1338 = vmatprep.subr.bf16.mxu0 %v1515_v52  ;;  %v1591_v52 = vld [vmem:[#allocation9 + $0x48] sm:$0xff]  }
  0xc1   :  { %1339 = vmatpush3.bf16.msra.mxu0 %v1518_v53  ;;  %v1590_v53 = vld [vmem:[#allocation9 + $0x88] sm:$0xff]  }
  0xc2   :  { %1340 = vmatprep.subr.bf16.mxu0 %v1520_v54  ;;  %v1592_v54 = vld [vmem:[#allocation9 + $0x8] sm:$0xff]  }
  0xc5   :  { %1341 = vmatpush3.bf16.msra.mxu0 %v1523_v55  ;;  %v1594_v55 = vld [vmem:[#allocation9 + $0x40] sm:$0xff]  }
  0xc6   :  { %1342 = vmatprep.subr.bf16.mxu0 %v1525_v56  ;;  %v1593_v56 = vld [vmem:[#allocation9 + $0x80] sm:$0xff]  }
  0xc9   :  { %1343 = vmatpush3.bf16.msra.mxu0 %v1528_v57  ;;  %v1595_v57 = vld [vmem:[#allocation9] sm:$0xff]  }
  0xca   :  { %1344 = vmatprep.subr.bf16.mxu0 %v1530_v58  ;;  %v285_v58 = vshrl.u32 %v101_v43, 7 }
  0xcd   :  { %1345 = vmatpush3.bf16.msra.mxu0 %v1533_v59  ;;  %v294_v59 = vsub.s32 2, %v285_v58 }
  0xce   :  { %1346 = vmatprep.subr.bf16.mxu0 %v1535_v60  ;;  %v282_v60 = vld [vmem:[%s1884_s6] sm:$0x7] }
  0xcf   :  { %v295_v63 = vrot.slane %v282_v60, %v294_v59 }
  0xd1   :  { %1347 = vmatpush3.bf16.msra.mxu0 %v1538_v61 }
  0xd2   :  { %796 = vmatprep.subr.bf16.mxu0 %v1542_v3 }
 0x174   :  { %v207_v4 = vpop.f32.mrf.mxu0 }
 0x175   :  { %v1828_v7 = vpack.c.bf16 %v207_v4, %v207_v4 }
 0x176   :  { %v1412_v9 = vpop.f32.mrf.mxu0 }
 0x177   :  { %588 = vmatmul.mubr.bf16.vlgmr.msra.gmra.mxu1 %v1828_v7  ;;  %629 = vmatmul.mubr.bf16.vlgmr.msra.gmra.mxu0 %v1828_v7 }
 0x178   :  { %797 = vmatpush1.bf16.msra.mxu0 %v1540_v5  ;;  %v210_v10 = vpop.f32.mrf.mxu0  ;;  %1415 = vmatpush3.bf16.msra.mxu1 %v1561_v6 }
 0x179   :  { %798 = vmatprep.subr.bf16.mxu0 %v1545_v8  ;;  %1416 = vmatprep.subr.bf16.mxu1 %v1723_v1 }
 0x17a   :  { %v1413_v14 = vpop.f32.mrf.mxu0  ;;  %828 = vmatprep.mubr.bf16.mxu0 %v1722_v0  ;;  %1430 = vmatprep.mubr.msk.bf16.mxu1 %vm1724_vm0, %v1723_v1  ;;  %v1552_v0 = vld [vmem:[#allocation8 + $0x48] ss:$12 sps:$4 sm:$0xff]  }
 0x17c   :  { %799 = vmatpush1.bf16.msra.mxu0 %v1543_v11  ;;  %1417 = vmatpush3.bf16.msra.mxu1 %v1565_v12  ;;  %v286_v11 = vsub.s32 0, %v285_v58  ;;  %v290_v12 = vsub.s32 1, %v285_v58 }
 0x17d   :  { %800 = vmatprep.subr.bf16.mxu0 %v1548_v13  ;;  %1418 = vmatprep.subr.bf16.mxu1 %v1723_v1 }
 0x180   :  { %801 = vmatpush1.bf16.msra.mxu0 %v1546_v15  ;;  %1419 = vmatpush3.bf16.msra.mxu1 %v1566_v16  ;;  %v291_v15 = vrot.slane %v282_v60, %v290_v12 }
 0x181   :  { %802 = vmatprep.subr.bf16.mxu0 %v1551_v17  ;;  %1420 = vmatprep.subr.bf16.mxu1 %v1723_v1 }
 0x184   :  { %803 = vmatpush1.bf16.msra.mxu0 %v1549_v18  ;;  %1421 = vmatpush3.bf16.msra.mxu1 %v1567_v19 }
 0x185   :  { %804 = vmatprep.subr.bf16.mxu0 %v1554_v20  ;;  %1422 = vmatprep.subr.bf16.mxu1 %v1723_v1 }
 0x188   :  { %805 = vmatpush1.bf16.msra.mxu0 %v1552_v0  ;;  %1423 = vmatpush3.bf16.msra.mxu1 %v1568_v21 }
 0x189   :  { %806 = vmatprep.subr.bf16.mxu0 %v1557_v22  ;;  %1424 = vmatprep.subr.bf16.mxu1 %v1723_v1 }
 0x18c   :  { %807 = vmatpush1.bf16.msra.mxu0 %v1555_v23  ;;  %1425 = vmatpush3.bf16.msra.mxu1 %v1569_v24 }
 0x18d   :  { %808 = vmatprep.subr.bf16.mxu0 %v1560_v25  ;;  %1426 = vmatprep.subr.bf16.mxu1 %v1723_v1 }
 0x190   :  { %809 = vmatpush1.bf16.msra.mxu0 %v1558_v26  ;;  %1427 = vmatpush3.bf16.msra.mxu1 %v1570_v27 }
 0x191   :  { %810 = vmatprep.subr.bf16.mxu0 %v1564_v28  ;;  %1428 = vmatprep.subr.bf16.mxu1 %v1723_v1 }
 0x194   :  { %811 = vmatpush1.bf16.msra.mxu0 %v1562_v29  ;;  %1429 = vmatpush3.bf16.msra.mxu1 %v1571_v31  ;;  %v1297_v29 = vld [vmem:[%s1885_s7] ss:$0 sm:$0xff] }
 0x195   :  { %1434 = vmatprep.subr.bf16.mxu1 %v1723_v1  ;;  %1363 = vmatprep.subr.bf16.mxu0 %v1573_v34 }
 0x197   :  { %829 = vmatmul.mubr.bf16.vlgmr.msra.gmra.mxu0 %v217_v32  ;;  %1431 = vmatmul.mubr.bf16.vlgmr.msra.gmra.mxu1 %v217_v32 }
 0x198   :  { %1450 = vmatprep.mubr.msk.bf16.mxu1 %vm1724_vm0, %v1723_v1  ;;  %1435 = vmatpush3.bf16.msra.mxu1 %v1572_v33 }
 0x199   :  { %1436 = vmatprep.subr.bf16.mxu1 %v1723_v1  ;;  %1364 = vmatpush3.bf16.msra.mxu0 %v1574_v35 }
 0x19a   :  { %1365 = vmatprep.subr.bf16.mxu0 %v1576_v37 }
 0x19c   :  { %1437 = vmatpush3.bf16.msra.mxu1 %v1575_v36 }
 0x19d   :  { %1438 = vmatprep.subr.bf16.mxu1 %v1723_v1  ;;  %1366 = vmatpush3.bf16.msra.mxu0 %v1577_v38 }
 0x19e   :  { %1367 = vmatprep.subr.bf16.mxu0 %v1579_v40 }
 0x1a0   :  { %1439 = vmatpush3.bf16.msra.mxu1 %v1578_v39 }
 0x1a1   :  { %1440 = vmatprep.subr.bf16.mxu1 %v1723_v1  ;;  %1368 = vmatpush3.bf16.msra.mxu0 %v1580_v41 }
 0x1a2   :  { %1369 = vmatprep.subr.bf16.mxu0 %v1582_v44 }
 0x1a4   :  { %1441 = vmatpush3.bf16.msra.mxu1 %v1581_v42 }
 0x1a5   :  { %1442 = vmatprep.subr.bf16.mxu1 %v1723_v1  ;;  %1370 = vmatpush3.bf16.msra.mxu0 %v1583_v45 }
 0x1a6   :  { %1371 = vmatprep.subr.bf16.mxu0 %v1585_v47 }
 0x1a8   :  { %1443 = vmatpush3.bf16.msra.mxu1 %v1584_v46 }
 0x1a9   :  { %1444 = vmatprep.subr.bf16.mxu1 %v1723_v1  ;;  %1372 = vmatpush3.bf16.msra.mxu0 %v1586_v48 }
 0x1aa   :  { %1373 = vmatprep.subr.bf16.mxu0 %v1588_v49  ;;  %v1298_v49 = vld [vmem:[%s1887_s9] ss:$0 sm:$0xff] }
 0x1ac   :  { %1445 = vmatpush3.bf16.msra.mxu1 %v1587_v50 }
 0x1ad   :  { %1446 = vmatprep.subr.bf16.mxu1 %v1723_v1  ;;  %1374 = vmatpush3.bf16.msra.mxu0 %v1589_v51 }
 0x1ae   :  { %1375 = vmatprep.subr.bf16.mxu0 %v1591_v52 }
 0x1b0   :  { %1447 = vmatpush3.bf16.msra.mxu1 %v1590_v53 }
 0x1b1   :  { %1448 = vmatprep.subr.bf16.mxu1 %v1723_v1  ;;  %1376 = vmatpush3.bf16.msra.mxu0 %v1592_v54 }
 0x1b2   :  { %1377 = vmatprep.subr.bf16.mxu0 %v1594_v55 }
 0x1b4   :  { %1449 = vmatpush3.bf16.msra.mxu1 %v1593_v56 }
 0x1b5   :  { %1378 = vmatpush3.bf16.msra.mxu0 %v1595_v57 }
 0x1b7   :  { %1451 = vmatmul.mubr.bf16.vlgmr.msra.gmra.mxu1 %v1823_v2  ;;  %v287_v2 = vrot.slane %v282_v60, %v286_v11 }
 0x237   :  { %v589_v61 = vpop.f32.mrf.mxu1  ;;  %v1348_v62 = vpop.f32.mrf.mxu0 }
 0x238   :  { %v590_v43 = vadd.f32 %v589_v61, %v287_v2 }
 0x239   :  { %v591_v3 = vpop.f32.mrf.mxu1  ;;  %v1349_v4 = vpop.f32.mrf.mxu0 }
 0x23a   :  { %v1350_v1 = vadd.f32 %v1349_v4, %v1348_v62  ;;  %v592_v21 = vadd.f32 %v591_v3, %v291_v15 }
 0x23b   :  { %v593_v5 = vpop.f32.mrf.mxu1  ;;  %v1351_v6 = vpop.f32.mrf.mxu0 }
 0x23c   :  { %v631_v8 = vadd.f32 %v1350_v1, %v295_v63 }
 0x23d   :  { %v594_v9 = vpop.f32.mrf.mxu1  ;;  %v1352_v10 = vpop.f32.mrf.mxu0 }
 0x257   :  { %v830_v13 = vpop.f32.mrf.mxu0  ;;  %v871_v14 = vpop.f32.mrf.mxu1 }
 0x258   :  { %v877_v16 = vadd.f32 %v830_v13, %v590_v43  ;;  %v898_v32 = vadd.f32 %v1297_v29, %v871_v14 }
 0x259   :  { %v832_v17 = vpop.f32.mrf.mxu0  ;;  %v1432_v18 = vpop.f32.mrf.mxu1 }
 0x25a   :  { %v1295_v19 = vmul.f32 -1.442695, %v877_v16  ;;  %v884_v24 = vadd.f32 %v832_v17, %v592_v21 }
 0x25b   :  { %v834_v20 = vpop.f32.mrf.mxu0  ;;  %v874_v0 = vpop.f32.mrf.mxu1 }
 0x25c   :  { %1596 = vpow2.f32 %v1295_v19  ;;  %v1296_v25 = vmul.f32 -1.442695, %v884_v24 }
 0x25d   :  { %v835_v22 = vpop.f32.mrf.mxu0  ;;  %v1433_v23 = vpop.f32.mrf.mxu1 }
 0x25e   :  { %1598 = vpow2.f32 %v1296_v25 }
 0x269   :  { %v1597_v26 = vpop.eup %1596 }
 0x26a   :  { %v881_v27 = vadd.f32 1.0, %v1597_v26 }
 0x26b   :  { %v1599_v28 = vpop.eup %1598 }
 0x26c   :  { %1600 = vrcp.f32 %v881_v27  ;;  %v888_v31 = vadd.f32 1.0, %v1599_v28 }
 0x26e   :  { %1602 = vrcp.f32 %v888_v31 }
 0x277   :  { %v1181_v44 = vpop.f32.mrf.mxu1 }
 0x279   :  { %v1601_v33 = vpop.eup %1600  ;;  %v1452_v45 = vpop.f32.mrf.mxu1 }
 0x27a   :  { %v899_v34 = vmul.f32 %v1601_v33, %v898_v32 }
 0x27b   :  { %v1603_v36 = vpop.eup %1602  ;;  %v1184_v46 = vpop.f32.mrf.mxu1 }
 0x27c   :  { %v900_v35 = vadd.f32 %v899_v34, %v631_v8  ;;  %v902_v37 = vsub.f32 1.0, %v1603_v36  ;;  %v904_v40 = vmul.f32 %v1603_v36, %v1844_v30 }
 0x27d   :  { %v1453_v47 = vpop.f32.mrf.mxu1 }
 0x27e   :  { %1604 = vtanh.f32 %v900_v35 }
 0x28b   :  { %v1605_v38 = vpop.eup %1604 }
 0x28c   :  { %v903_v39 = vmul.f32 %v1605_v38, %v902_v37 }
 0x28e   :  { %v905_v41 = vadd.f32 %v904_v40, %v903_v39 }
 0x290   :  { %v907_v42 = vpack.c.bf16 %v905_v41, %v905_v41  ;;  %1191 = vst [vmem:[%s1889_s11] sm:$0xff] %v905_v41  ;;  %s1686_s11 = scalar_lea.vmem %s1199_s28, 128 }
 0x291   :  { %p1687_p6 = scmp.ne.s32.totalorder %s1199_s28, %s1686_s11  ;;  %p1692_p8 = scmp.lt.s32.totalorder %s1686_s11, %s1686_s11 }
 0x292   :  { %1139 = vmatprep.mubr.bf16.mxu0 %v907_v42 }
 0x293   :  { %1140 = vmatmul.mubr.bf16.vlgmr.msra.gmra.mxu0 %v1828_v7  ;;  %p1693_p9 = por %p1692_p8, %p1691_p7 }
 0x295   :  { %p1694_p10 = pnand %p1693_p9, %p1687_p6 }
 0x353   :  { %v1379_v48 = vpop.f32.mrf.mxu0 }
 0x355   :  { %v1380_v50 = vpop.f32.mrf.mxu0 }
 0x356   :  { %v1381_v30 = vadd.f32 %v1380_v50, %v1379_v48 }
 0x357   :  { %v1382_v51 = vpop.f32.mrf.mxu0 }
 0x358   :  { %v1142_v52 = vadd.f32 %v1381_v30, %v1298_v49 }
 0x359   :  { %v1383_v53 = vpop.f32.mrf.mxu0 }
 0x35a   :  { %v1182_v54 = vadd.f32 %v1181_v44, %v1142_v52 }
 0x35c   :  { %1187 = vst [vmem:[#allocation11] sm:$0xff] %v1182_v54 }
 0x35d   :  { %1697 = shalt.err (!%p1694_p10)
}
 0x35e   :  { %1201 = dma.vmem_to_hbm [thread:$0]  %s1199_s28, 128, %s1888_s10, [#allocation5]  }
 0x35f   :  { %1712 = dma.done.wait [#allocation5], 128  }
 0x360   :  { %1713 = vsyncadd [#allocation5], 4294967168 }
 0x361   :  { %1209 = vsyncpa [#allocation4], 1 }
 0x362   :  { %1210 = vsyncpa [#allocation7], 1 }
 0x363   :  { %1211 = vsyncpa [#allocation10], 1 }
 0x364   :  { %1212 = vsyncpa [#allocation5], 1 }

</bundles_post_ra>
